<compile_context>
chip_gen: v7x
topology: tpu7x:2x2x1
jax: 0.10.0
libtpu: 0.0.40
codegen_flags: <defaults>
</compile_context>

<pallas_src>
from collections import OrderedDict

import jax
import jax.numpy as jnp
from jax import lax
from jax.experimental import pallas as pl
from jax.experimental.pallas import tpu as pltpu


def _softplus(x):
    # numerically stable softplus:
    #   BCEWithLogits(x, target=1) = softplus(-x)
    #   BCEWithLogits(x, target=0) = softplus(x)
    return jnp.maximum(x, 0.0) + jnp.log1p(jnp.exp(-jnp.abs(x)))


def _make_unsupervised_kernel(B, N, Vp):
    BN = B * N

    def kernel(tgt_ids_ref, ctx_ids_ref, neg_ids_ref,   # [B,1]/[B,1]/[BN,1] i32 VMEM
               tgt_tab_ref, ctx_tab_ref,                 # [Vp, Dp] f32 VMEM (zero padded)
               out_ref):                                 # SMEM f32[2] = [loss, mrr]
        # ---- gather-by-matmul: exact 0/1 one-hot rows, contracted on the MXU ----
        v_iota_b = lax.broadcasted_iota(jnp.int32, (B, Vp), 1)
        oh_t = (v_iota_b == tgt_ids_ref[...]).astype(jnp.float32)    # [B, Vp]
        oh_c = (v_iota_b == ctx_ids_ref[...]).astype(jnp.float32)    # [B, Vp]
        v_iota_n = lax.broadcasted_iota(jnp.int32, (BN, Vp), 1)
        oh_n = (v_iota_n == neg_ids_ref[...]).astype(jnp.float32)    # [BN, Vp]

        tgt = jnp.dot(oh_t, tgt_tab_ref[...],
                      preferred_element_type=jnp.float32)            # [B, Dp]
        ctx = jnp.dot(oh_c, ctx_tab_ref[...],
                      preferred_element_type=jnp.float32)            # [B, Dp]
        neg = jnp.dot(oh_n, ctx_tab_ref[...],
                      preferred_element_type=jnp.float32)            # [BN, Dp]

        # positive logits: sum(target * context, dim=-1)  (lane-dense reduce)
        pos = jnp.sum(tgt * ctx, axis=-1, keepdims=True)             # [B, 1]

        # all negative-vs-target dot products on the MXU: S[r, b] = neg[r].tgt[b]
        S = lax.dot_general(neg, tgt, (((1,), (1,)), ((), ())),
                            preferred_element_type=jnp.float32)      # [BN, B]

        # group membership masks (0/1): GT[r,b] = G[b,r] = 1 iff r belongs to batch b
        r_i = lax.broadcasted_iota(jnp.int32, (BN, B), 0)
        b_i = lax.broadcasted_iota(jnp.int32, (BN, B), 1)
        GT = jnp.logical_and(r_i >= b_i * N,
                             r_i < (b_i + 1) * N).astype(jnp.float32)  # [BN, B]
        r_j = lax.broadcasted_iota(jnp.int32, (B, BN), 1)
        b_j = lax.broadcasted_iota(jnp.int32, (B, BN), 0)
        G = jnp.logical_and(r_j >= b_j * N,
                            r_j < (b_j + 1) * N).astype(jnp.float32)   # [B, BN]

        # select this row's target dot product / positive logit (exact 0/1 selection)
        negl = jnp.sum(S * GT, axis=-1, keepdims=True)               # [BN, 1]
        pos_rep = jnp.dot(GT, pos,
                          preferred_element_type=jnp.float32)        # [BN, 1]

        # neg_cross_entropy: BCE-with-logits, reduction='sum', over pos + neg
        loss = jnp.sum(_softplus(-pos)) + jnp.sum(_softplus(negl))

        # mrr: rank of the positive among [negatives, positive] (ties absent)
        gtm = (negl > pos_rep).astype(jnp.float32)                   # [BN, 1]
        ranks = jnp.dot(G, gtm,
                        preferred_element_type=jnp.float32)          # [B, 1] exact ints
        mrr = jnp.sum(1.0 / (ranks + 1.0)) * (1.0 / B)

        out_ref[0] = loss
        out_ref[1] = mrr

    return kernel


def unsupervised_loss_and_metrics(target_ids, context_ids, negative_ids,
                                  target_table, context_table):
    B = int(target_ids.shape[0])
    N = int(negative_ids.shape[-1])
    V, D = (int(s) for s in target_table.shape)
    BN = B * N

    # lane-dense padding: vocabulary axis (one-hot lane axis) and embedding axis
    # padded to multiples of 128; zero padding is exact for all dot products.
    Vp = ((V + 127) // 128) * 128
    Dp = ((D + 127) // 128) * 128
    tgt_tab = jnp.pad(target_table.astype(jnp.float32), ((0, Vp - V), (0, Dp - D)))
    ctx_tab = jnp.pad(context_table.astype(jnp.float32), ((0, Vp - V), (0, Dp - D)))

    tgt_ids = target_ids.astype(jnp.int32).reshape(B, 1)
    ctx_ids = context_ids.astype(jnp.int32).reshape(B, 1)
    neg_ids = negative_ids.astype(jnp.int32).reshape(BN, 1)

    vmem = pltpu.MemorySpace.VMEM
    smem = pltpu.MemorySpace.SMEM

    out = pl.pallas_call(
        _make_unsupervised_kernel(B, N, Vp),
        out_shape=jax.ShapeDtypeStruct((2,), jnp.float32),
        in_specs=[
            pl.BlockSpec(memory_space=vmem),   # target ids      [B, 1]
            pl.BlockSpec(memory_space=vmem),   # context ids     [B, 1]
            pl.BlockSpec(memory_space=vmem),   # negative ids    [B*N, 1]
            pl.BlockSpec(memory_space=vmem),   # target table    [Vp, Dp]
            pl.BlockSpec(memory_space=vmem),   # context table   [Vp, Dp]
        ],
        out_specs=pl.BlockSpec(memory_space=smem),
    )(tgt_ids, ctx_ids, neg_ids, tgt_tab, ctx_tab)

    return OrderedDict(loss=out[0], mrr=out[1])


class Unsupervised:
    """JAX/Pallas counterpart of galileo.pytorch.Unsupervised with simple
    embedding-table encoders (the abstract encoders of the base class)."""

    def __init__(self, num_nodes=50, dim=32, key=None,
                 loss_name='neg_cross_entropy', metric_names='mrr'):
        if key is None:
            key = jax.random.PRNGKey(0)
        k1, k2 = jax.random.split(key)
        self.loss_name = loss_name
        self.metric_names = [metric_names] if isinstance(metric_names, str) else metric_names
        # deterministic parameter init (synthetic, not a checkpoint load)
        self.target_table = 0.1 * jax.random.normal(k1, (num_nodes, dim), jnp.float32)
        self.context_table = 0.1 * jax.random.normal(k2, (num_nodes, dim), jnp.float32)

    # reference-path encoders (the Pallas path does the lookups in-kernel)
    def target_encoder(self, ids):
        return jnp.take(self.target_table, ids.astype(jnp.int32), axis=0)

    def context_encoder(self, ids):
        return jnp.take(self.context_table, ids.astype(jnp.int32), axis=0)

    def __call__(self, inputs):
        target_ids, context_ids, negative_ids = inputs
        return unsupervised_loss_and_metrics(
            target_ids, context_ids, negative_ids,
            self.target_table, self.context_table)


def _reference(t, c, n):
    pos = jnp.sum(t * c, axis=-1)
    negl = jnp.sum(t[:, None, :] * n, axis=-1)
    loss = jnp.sum(jax.nn.softplus(-pos)) + jnp.sum(jax.nn.softplus(negl))
    ranks = jnp.sum((negl > pos[:, None]).astype(jnp.float32), axis=-1)
    mrr = jnp.mean(1.0 / (ranks + 1.0))
    return loss, mrr


if __name__ == "__main__":
    key = jax.random.PRNGKey(0)
    k_model, k_t, k_c, k_off = jax.random.split(key, 4)

    B, N, D, NUM_NODES = 8, 5, 32, 50
    model = Unsupervised(num_nodes=NUM_NODES, dim=D, key=k_model)

    target_ids = jax.random.randint(k_t, (B,), 0, NUM_NODES)
    context_ids = jax.random.randint(k_c, (B,), 0, NUM_NODES)
    # negatives guaranteed to differ from the positive context id of the same
    # row -> no exact logit ties (the MRR rank comparison assumes no ties).
    offsets = jax.random.randint(k_off, (B, N), 1, NUM_NODES)
    negative_ids = (context_ids[:, None] + offsets) % NUM_NODES

    outputs = model((target_ids, context_ids, negative_ids))
    jax.block_until_ready(outputs)

    # correctness check against a pure-JAX reference
    t = model.target_encoder(target_ids)
    c = model.context_encoder(context_ids)
    n = model.context_encoder(negative_ids)
    ref_loss, ref_mrr = _reference(t, c, n)
    assert jnp.allclose(outputs["loss"], ref_loss, rtol=1e-5, atol=1e-5), \
        (outputs["loss"], ref_loss)
    assert jnp.allclose(outputs["mrr"], ref_mrr, rtol=1e-5, atol=1e-5), \
        (outputs["mrr"], ref_mrr)

    print("KERNEL_OK")
</pallas_src>

<mosaic_0001>
module attributes {stable_mosaic.version = 11 : i64} {
  func.func @kernel(%arg0: memref<8x1xi32, #tpu.memory_space<vmem>>, %arg1: memref<8x1xi32, #tpu.memory_space<vmem>>, %arg2: memref<40x1xi32, #tpu.memory_space<vmem>>, %arg3: memref<128x128xf32, #tpu.memory_space<vmem>>, %arg4: memref<128x128xf32, #tpu.memory_space<vmem>>, %arg5: memref<2xf32, #tpu.memory_space<smem>>) attributes {dimension_semantics = [], scalar_prefetch = 0 : i64, scratch_operands = 0 : i64, tpu.core_type = #tpu.core_type<tc>} {
    %0 = tpu.iota {dimensions = array<i32: 1>} : vector<8x128xi32>
    %c0 = arith.constant 0 : index
    %c0_0 = arith.constant 0 : index
    %1 = vector.load %arg0[%c0, %c0_0] : memref<8x1xi32, #tpu.memory_space<vmem>>, vector<8x1xi32>
    %2 = vector.broadcast %1 : vector<8x1xi32> to vector<8x128xi32>
    %3 = arith.cmpi eq, %0, %2 : vector<8x128xi32>
    %4 = arith.extui %3 : vector<8x128xi1> to vector<8x128xi32>
    %5 = arith.sitofp %4 : vector<8x128xi32> to vector<8x128xf32>
    %c0_1 = arith.constant 0 : index
    %c0_2 = arith.constant 0 : index
    %6 = vector.load %arg1[%c0_1, %c0_2] : memref<8x1xi32, #tpu.memory_space<vmem>>, vector<8x1xi32>
    %7 = vector.broadcast %6 : vector<8x1xi32> to vector<8x128xi32>
    %8 = arith.cmpi eq, %0, %7 : vector<8x128xi32>
    %9 = arith.extui %8 : vector<8x128xi1> to vector<8x128xi32>
    %10 = arith.sitofp %9 : vector<8x128xi32> to vector<8x128xf32>
    %11 = tpu.iota {dimensions = array<i32: 1>} : vector<40x128xi32>
    %c0_3 = arith.constant 0 : index
    %c0_4 = arith.constant 0 : index
    %12 = vector.load %arg2[%c0_3, %c0_4] : memref<40x1xi32, #tpu.memory_space<vmem>>, vector<40x1xi32>
    %13 = vector.broadcast %12 : vector<40x1xi32> to vector<40x128xi32>
    %14 = arith.cmpi eq, %11, %13 : vector<40x128xi32>
    %15 = arith.extui %14 : vector<40x128xi1> to vector<40x128xi32>
    %16 = arith.sitofp %15 : vector<40x128xi32> to vector<40x128xf32>
    %c0_5 = arith.constant 0 : index
    %c0_6 = arith.constant 0 : index
    %17 = vector.load %arg3[%c0_5, %c0_6] : memref<128x128xf32, #tpu.memory_space<vmem>>, vector<128x128xf32>
    %cst = arith.constant dense<0.000000e+00> : vector<8x128xf32>
    %18 = tpu.matmul %5, %17, %cst {dimension_numbers = #tpu.dot_dimension_numbers<[1], [0], [0], [1], [0, 0, 1, 1], [], []>} : vector<8x128xf32>, vector<128x128xf32>, vector<8x128xf32> -> vector<8x128xf32>
    %c0_7 = arith.constant 0 : index
    %c0_8 = arith.constant 0 : index
    %19 = vector.load %arg4[%c0_7, %c0_8] : memref<128x128xf32, #tpu.memory_space<vmem>>, vector<128x128xf32>
    %cst_9 = arith.constant dense<0.000000e+00> : vector<8x128xf32>
    %20 = tpu.matmul %10, %19, %cst_9 {dimension_numbers = #tpu.dot_dimension_numbers<[1], [0], [0], [1], [0, 0, 1, 1], [], []>} : vector<8x128xf32>, vector<128x128xf32>, vector<8x128xf32> -> vector<8x128xf32>
    %c0_10 = arith.constant 0 : index
    %c0_11 = arith.constant 0 : index
    %21 = vector.load %arg4[%c0_10, %c0_11] : memref<128x128xf32, #tpu.memory_space<vmem>>, vector<128x128xf32>
    %cst_12 = arith.constant dense<0.000000e+00> : vector<40x128xf32>
    %22 = tpu.matmul %16, %21, %cst_12 {dimension_numbers = #tpu.dot_dimension_numbers<[1], [0], [0], [1], [0, 0, 1, 1], [], []>} : vector<40x128xf32>, vector<128x128xf32>, vector<40x128xf32> -> vector<40x128xf32>
    %23 = arith.mulf %18, %20 : vector<8x128xf32>
    %cst_13 = arith.constant dense<0.000000e+00> : vector<8xf32>
    %24 = vector.multi_reduction <add>, %23, %cst_13 [1] : vector<8x128xf32> to vector<8xf32>
    %25 = vector.shape_cast %24 : vector<8xf32> to vector<8x1xf32>
    %cst_14 = arith.constant dense<0.000000e+00> : vector<40x8xf32>
    %26 = tpu.matmul %22, %18, %cst_14 {dimension_numbers = #tpu.dot_dimension_numbers<[1], [1], [0], [0], [0, 0, 1, 0], [], []>} : vector<40x128xf32>, vector<8x128xf32>, vector<40x8xf32> -> vector<40x8xf32>
    %27 = tpu.iota {dimensions = array<i32: 0>} : vector<40x8xi32>
    %28 = tpu.iota {dimensions = array<i32: 1>} : vector<40x8xi32>
    %c5_i32 = arith.constant 5 : i32
    %29 = vector.broadcast %c5_i32 : i32 to vector<40x8xi32>
    %30 = arith.muli %28, %29 : vector<40x8xi32>
    %31 = arith.cmpi sge, %27, %30 : vector<40x8xi32>
    %c1_i32 = arith.constant 1 : i32
    %32 = vector.broadcast %c1_i32 : i32 to vector<40x8xi32>
    %33 = arith.addi %28, %32 : vector<40x8xi32>
    %c5_i32_15 = arith.constant 5 : i32
    %34 = vector.broadcast %c5_i32_15 : i32 to vector<40x8xi32>
    %35 = arith.muli %33, %34 : vector<40x8xi32>
    %36 = arith.cmpi slt, %27, %35 : vector<40x8xi32>
    %37 = arith.andi %31, %36 : vector<40x8xi1>
    %38 = arith.extui %37 : vector<40x8xi1> to vector<40x8xi32>
    %39 = arith.sitofp %38 : vector<40x8xi32> to vector<40x8xf32>
    %40 = tpu.iota {dimensions = array<i32: 1>} : vector<8x40xi32>
    %41 = tpu.iota {dimensions = array<i32: 0>} : vector<8x40xi32>
    %c5_i32_16 = arith.constant 5 : i32
    %42 = vector.broadcast %c5_i32_16 : i32 to vector<8x40xi32>
    %43 = arith.muli %41, %42 : vector<8x40xi32>
    %44 = arith.cmpi sge, %40, %43 : vector<8x40xi32>
    %c1_i32_17 = arith.constant 1 : i32
    %45 = vector.broadcast %c1_i32_17 : i32 to vector<8x40xi32>
    %46 = arith.addi %41, %45 : vector<8x40xi32>
    %c5_i32_18 = arith.constant 5 : i32
    %47 = vector.broadcast %c5_i32_18 : i32 to vector<8x40xi32>
    %48 = arith.muli %46, %47 : vector<8x40xi32>
    %49 = arith.cmpi slt, %40, %48 : vector<8x40xi32>
    %50 = arith.andi %44, %49 : vector<8x40xi1>
    %51 = arith.extui %50 : vector<8x40xi1> to vector<8x40xi32>
    %52 = arith.sitofp %51 : vector<8x40xi32> to vector<8x40xf32>
    %53 = arith.mulf %26, %39 : vector<40x8xf32>
    %cst_19 = arith.constant dense<0.000000e+00> : vector<40xf32>
    %54 = vector.multi_reduction <add>, %53, %cst_19 [1] : vector<40x8xf32> to vector<40xf32>
    %55 = vector.shape_cast %54 : vector<40xf32> to vector<40x1xf32>
    %cst_20 = arith.constant dense<0.000000e+00> : vector<40x1xf32>
    %56 = tpu.matmul %39, %25, %cst_20 {dimension_numbers = #tpu.dot_dimension_numbers<[1], [0], [0], [1], [0, 0, 1, 1], [], []>} : vector<40x8xf32>, vector<8x1xf32>, vector<40x1xf32> -> vector<40x1xf32>
    %cst_21 = arith.constant 0.000000e+00 : f32
    %57 = vector.broadcast %cst_21 : f32 to vector<8x1xf32>
    %58 = arith.subf %57, %25 : vector<8x1xf32>
    %cst_22 = arith.constant 0.000000e+00 : f32
    %59 = vector.broadcast %cst_22 : f32 to vector<8x1xf32>
    %60 = arith.maximumf %58, %59 : vector<8x1xf32>
    %61 = math.absf %58 : vector<8x1xf32>
    %cst_23 = arith.constant 0.000000e+00 : f32
    %62 = vector.broadcast %cst_23 : f32 to vector<8x1xf32>
    %63 = arith.subf %62, %61 : vector<8x1xf32>
    %64 = math.exp %63 : vector<8x1xf32>
    %65 = math.log1p %64 : vector<8x1xf32>
    %66 = arith.addf %60, %65 : vector<8x1xf32>
    %67 = vector.shape_cast %66 : vector<8x1xf32> to vector<1x8x1xf32>
    %cst_24 = arith.constant dense<0.000000e+00> : vector<1xf32>
    %68 = vector.multi_reduction <add>, %67, %cst_24 [1, 2] : vector<1x8x1xf32> to vector<1xf32>
    %69 = vector.shape_cast %68 : vector<1xf32> to vector<1x1x1xf32>
    %70 = vector.extract %69[0, 0, 0] : f32 from vector<1x1x1xf32>
    %cst_25 = arith.constant 0.000000e+00 : f32
    %71 = vector.broadcast %cst_25 : f32 to vector<40x1xf32>
    %72 = arith.maximumf %55, %71 : vector<40x1xf32>
    %73 = math.absf %55 : vector<40x1xf32>
    %cst_26 = arith.constant 0.000000e+00 : f32
    %74 = vector.broadcast %cst_26 : f32 to vector<40x1xf32>
    %75 = arith.subf %74, %73 : vector<40x1xf32>
    %76 = math.exp %75 : vector<40x1xf32>
    %77 = math.log1p %76 : vector<40x1xf32>
    %78 = arith.addf %72, %77 : vector<40x1xf32>
    %79 = vector.shape_cast %78 : vector<40x1xf32> to vector<1x40x1xf32>
    %cst_27 = arith.constant dense<0.000000e+00> : vector<1xf32>
    %80 = vector.multi_reduction <add>, %79, %cst_27 [1, 2] : vector<1x40x1xf32> to vector<1xf32>
    %81 = vector.shape_cast %80 : vector<1xf32> to vector<1x1x1xf32>
    %82 = vector.extract %81[0, 0, 0] : f32 from vector<1x1x1xf32>
    %83 = arith.addf %70, %82 : f32
    %84 = arith.cmpf ogt, %55, %56 : vector<40x1xf32>
    %85 = arith.extui %84 : vector<40x1xi1> to vector<40x1xi32>
    %86 = arith.sitofp %85 : vector<40x1xi32> to vector<40x1xf32>
    %cst_28 = arith.constant dense<0.000000e+00> : vector<8x1xf32>
    %87 = tpu.matmul %52, %86, %cst_28 {dimension_numbers = #tpu.dot_dimension_numbers<[1], [0], [0], [1], [0, 0, 1, 1], [], []>} : vector<8x40xf32>, vector<40x1xf32>, vector<8x1xf32> -> vector<8x1xf32>
    %cst_29 = arith.constant 1.000000e+00 : f32
    %88 = vector.broadcast %cst_29 : f32 to vector<8x1xf32>
    %89 = arith.addf %87, %88 : vector<8x1xf32>
    %cst_30 = arith.constant 1.000000e+00 : f32
    %90 = vector.broadcast %cst_30 : f32 to vector<8x1xf32>
    %91 = arith.divf %90, %89 : vector<8x1xf32>
    %92 = vector.shape_cast %91 : vector<8x1xf32> to vector<1x8x1xf32>
    %cst_31 = arith.constant dense<0.000000e+00> : vector<1xf32>
    %93 = vector.multi_reduction <add>, %92, %cst_31 [1, 2] : vector<1x8x1xf32> to vector<1xf32>
    %94 = vector.shape_cast %93 : vector<1xf32> to vector<1x1x1xf32>
    %95 = vector.extract %94[0, 0, 0] : f32 from vector<1x1x1xf32>
    %cst_32 = arith.constant 1.250000e-01 : f32
    %96 = arith.mulf %95, %cst_32 : f32
    %c0_33 = arith.constant 0 : index
    %97 = memref.load %arg5[%c0_33] : memref<2xf32, #tpu.memory_space<smem>>
    memref.store %83, %arg5[%c0_33] : memref<2xf32, #tpu.memory_space<smem>>
    %c1 = arith.constant 1 : index
    %98 = memref.load %arg5[%c1] : memref<2xf32, #tpu.memory_space<smem>>
    memref.store %96, %arg5[%c1] : memref<2xf32, #tpu.memory_space<smem>>
    return
  }
}

</mosaic_0001>

<bundles_post_ra>
// kernel: tpu_custom_call.1
= control target key start
LH: loop header
LB: loop body
LE: loop exit
PB: predicated region body
PF: predicated region fallthrough
CT: control target
= control target key end

     0   :  { %10 = vsyncpa [#allocation3], 0  ;;  %s1589_s0 = inlined_call_operand.vmem [shape: s32[8,1], index: 0, kind: input, shape index: {}]   ;;  %s1590_s1 = inlined_call_operand.vmem [shape: s32[8,1], index: 1, kind: input, shape index: {}]   ;;  %s1591_s2 = inlined_call_operand.vmem [shape: s32[40,1], index: 2, kind: input, shape index: {}]   ;;  %s1592_s3 = inlined_call_operand.hbm [shape: f32[128,128], index: 3, kind: input, shape index: {}]   ;;  %s1593_s4 = inlined_call_operand.hbm [shape: f32[128,128], index: 4, kind: input, shape index: {}]   ;;  %s1594_s5 = inlined_call_operand.hbm [shape: f32[2], index: 5, kind: output, shape index: {}]  }
   0x1   :  { %11 = vsyncpa [#allocation6], 0 }
   0x2   :  { %12 = vsyncpa [#allocation4], 0  ;;  %s1321_s18 = smov [#allocation2]   ;;  %s1261_s22 = scalar_lea.hbm %s1592_s3, 2048 }
   0x3   :  { %s24_s19 = sshll.u32 %s1321_s18, 4  ;;  %p1262_p0 = scmp.ne.s32.totalorder %s1592_s3, %s1261_s22  ;;  %s25_s19 = int_to_ptr.vmem [resolvable:$true] %s24_s19 }
   0x4   :  { %p1265_p1 = scmp.lt.u32.totalorder %s1261_s22, %s1592_s3 }
   0x6   :  { %p1267_p2 = pnand %p1265_p1, %p1262_p0 }
   0x8   :  { %1270 = shalt.err (!%p1267_p2)
}
   0x9   :  { %s1271_s27 = scalar_lea.vmem %s25_s19, 2048  ;;  %p1276_p4 = scmp.lt.s32.totalorder %s25_s19, %s25_s19 }
   0xa   :  { %p1272_p3 = scmp.ne.s32.totalorder %s25_s19, %s1271_s27  ;;  %p1277_p5 = scmp.lt.s32.totalorder %s1271_s27, %s1271_s27 }
   0xc   :  { %p1278_p6 = por %p1277_p5, %p1276_p4 }
   0xe   :  { %p1279_p7 = pnand %p1278_p6, %p1272_p3 }
  0x10   :  { %1282 = shalt.err (!%p1279_p7)
}
  0x11   :  { %s1322_s28 = smov 128   ;;  %s1323_s29 = smov 8  }
  0x12   :  { %30 = dma.hbm_to_vmem [thread:$0]  %s1592_s3, 2048, %s25_s19, [#allocation3], %s1322_s28, %s1322_s28, %s1323_s29  }
  0x13   :  { %s1324_s7 = smov [#allocation5]   ;;  %s1283_s11 = scalar_lea.hbm %s1593_s4, 2048 }
  0x14   :  { %s36_s8 = sshll.u32 %s1324_s7, 4  ;;  %p1284_p8 = scmp.ne.s32.totalorder %s1593_s4, %s1283_s11  ;;  %s37_s8 = int_to_ptr.vmem [resolvable:$true] %s36_s8 }
  0x15   :  { %p1287_p9 = scmp.lt.u32.totalorder %s1283_s11, %s1593_s4 }
  0x17   :  { %p1289_p10 = pnand %p1287_p9, %p1284_p8 }
  0x19   :  { %1292 = shalt.err (!%p1289_p10)
}
  0x1a   :  { %s1293_s16 = scalar_lea.vmem %s37_s8, 2048  ;;  %p1298_p12 = scmp.lt.s32.totalorder %s37_s8, %s37_s8 }
  0x1b   :  { %p1294_p11 = scmp.ne.s32.totalorder %s37_s8, %s1293_s16  ;;  %p1299_p13 = scmp.lt.s32.totalorder %s1293_s16, %s1293_s16 }
  0x1d   :  { %p1300_p0 = por %p1299_p13, %p1298_p12 }
  0x1f   :  { %p1301_p1 = pnand %p1300_p0, %p1294_p11 }
  0x21   :  { %1304 = shalt.err (!%p1301_p1)
}
  0x22   :  { %42 = dma.hbm_to_vmem [thread:$0]  %s1593_s4, 2048, %s37_s8, [#allocation6], %s1322_s28, %s1322_s28, %s1323_s29  }
  0x23   :  { %1315 = dma.done.wait [#allocation3], 2048  }
  0x24   :  { %1316 = vsyncadd [#allocation3], 4294965248 }
  0x25   :  { %1317 = dma.done.wait [#allocation6], 2048  }
  0x26   :  { %1318 = vsyncadd [#allocation6], 4294965248  ;;  %v1325_v0 = vmov 0   ;;  %v1326_v1 = vmov 0.0|0.0   ;;  %v51_v2 = vld [vmem:[%s1589_s0] sm:$0xff]  ;;  %vm1327_vm0 = vmmov 0   ;;  %v49_v58 = vlaneseq }
  0x27   :  { %1233 = vset.pattern.permute.xlu0 %v1325_v0  ;;  %1234 = vset.pattern.permute.xlu1 %v1325_v0  ;;  %v58_v3 = vld [vmem:[%s1590_s1] sm:$0xff]  ;;  %v1328_v5 = vmov 0.0   ;;  %v66_v6 = vld [vmem:[%s1591_s2 + $0x8] sm:$0xff]  ;;  %v100_v7 = vld [vmem:[#allocation2] sm:$0xff]  ;;  %v1329_v61 = vmov 1.0   ;;  %vm502_vm13 = vcmask 64512  }
  0x28   :  { %1138 = vmatprep.subr.bf16.mxu0 %v1326_v1  ;;  %1162 = vmatprep.subr.bf16.mxu1 %v1326_v1  ;;  %v65_v4 = vld [vmem:[%s1591_s2] sm:$0xff]  ;;  %v101_v8 = vld [vmem:[#allocation2 + $0x8] sm:$0xff]  ;;  %v103_v11 = vld [vmem:[#allocation2 + $0x18] sm:$0xff]  ;;  %v1439_v59 = vand.u32 127, %v49_v58  ;;  %s1305_s10 = scalar_lea.hbm %s1594_s5, 16 }
  0x29   :  { %53 = vperm.xlu0 %1233, %v51_v2   ;;  %1006 = vmatprep.mubr.msk.f32.mxu0 %vm1327_vm0, %v1328_v5  ;;  %v1139_v9 = vpack.c.bf16 %v101_v8, %v100_v7  ;;  %v102_v10 = vld [vmem:[#allocation2 + $0x10] sm:$0xff]  ;;  %v186_v12 = vld [vmem:[#allocation5] sm:$0xff]  ;;  %v187_v13 = vld [vmem:[#allocation5 + $0x8] sm:$0xff]  ;;  %p1306_p2 = scmp.ne.s32.totalorder %s1594_s5, %s1305_s10  ;;  %p1309_p3 = scmp.lt.u32.totalorder %s1305_s10, %s1594_s5 }
  0x2a   :  { %71 = vperm.xlu1 %1234, %v65_v4   ;;  %1041 = vmatprep.mubr.msk.f32.mxu1 %vm1327_vm0, %v1328_v5  ;;  %v1142_v14 = vpack.c.bf16 %v103_v11, %v102_v10  ;;  %v1404_v15 = vpack.c.bf16 %v187_v13, %v186_v12  ;;  %v188_v16 = vld [vmem:[#allocation5 + $0x10] sm:$0xff]  ;;  %v189_v17 = vld [vmem:[#allocation5 + $0x18] sm:$0xff]  ;;  %v67_v18 = vld [vmem:[%s1591_s2 + $0x10] sm:$0xff] }
  0x2b   :  { %1140 = vmatpush3.bf16.msra.mxu0 %v1139_v9  ;;  %v104_v19 = vld [vmem:[#allocation2 + $0x20] sm:$0xff]  ;;  %v105_v20 = vld [vmem:[#allocation2 + $0x28] sm:$0xff]  ;;  %v1414_v22 = vpack.c.bf16 %v189_v17, %v188_v16  ;;  %v69_v26 = vld [vmem:[%s1591_s2 + $0x20] sm:$0xff]  ;;  %p1311_p4 = pnand %p1309_p3, %p1306_p2 }
  0x2c   :  { %1141 = vmatprep.subr.bf16.mxu0 %v1326_v1  ;;  %v68_v21 = vld [vmem:[%s1591_s2 + $0x18] sm:$0xff]  ;;  %1164 = vmatpush3.bf16.msra.mxu1 %v1404_v15  ;;  %v190_v23 = vld [vmem:[#allocation5 + $0x20] sm:$0xff]  ;;  %v1145_v25 = vpack.c.bf16 %v105_v20, %v104_v19  ;;  %v106_v27 = vld [vmem:[#allocation2 + $0x30] sm:$0xff] }
  0x2d   :  { %60 = vperm.xlu0 %1233, %v58_v3   ;;  %1165 = vmatprep.subr.bf16.mxu1 %v1326_v1  ;;  %v191_v24 = vld [vmem:[#allocation5 + $0x28] sm:$0xff]  ;;  %v107_v28 = vld [vmem:[#allocation2 + $0x38] sm:$0xff]  ;;  %v192_v30 = vld [vmem:[#allocation5 + $0x30] sm:$0xff] }
  0x2e   :  { %74 = vperm.xlu1 %1234, %v66_v6   ;;  %v1422_v29 = vpack.c.bf16 %v191_v24, %v190_v23  ;;  %v193_v31 = vld [vmem:[#allocation5 + $0x38] sm:$0xff]  ;;  %v1148_v32 = vpack.c.bf16 %v107_v28, %v106_v27  ;;  %v108_v33 = vld [vmem:[#allocation2 + $0x40] sm:$0xff]  ;;  %v109_v34 = vld [vmem:[#allocation2 + $0x48] sm:$0xff]  ;;  %v461_v23 = vmul.u32 5, %v1439_v59 }
  0x2f   :  { %1143 = vmatpush3.bf16.msra.mxu0 %v1142_v14  ;;  %v1172_v35 = vpack.c.bf16 %v193_v31, %v192_v30  ;;  %v194_v36 = vld [vmem:[#allocation5 + $0x40] sm:$0xff]  ;;  %v195_v37 = vld [vmem:[#allocation5 + $0x48] sm:$0xff]  ;;  %v1151_v38 = vpack.c.bf16 %v109_v34, %v108_v33  ;;  %v110_v39 = vld [vmem:[#allocation2 + $0x50] sm:$0xff] }
  0x30   :  { %1144 = vmatprep.subr.bf16.mxu0 %v1326_v1  ;;  %1167 = vmatpush3.bf16.msra.mxu1 %v1414_v22  ;;  %v111_v40 = vld [vmem:[#allocation2 + $0x58] sm:$0xff]  ;;  %v1175_v41 = vpack.c.bf16 %v195_v37, %v194_v36  ;;  %v196_v42 = vld [vmem:[#allocation5 + $0x50] sm:$0xff]  ;;  %v112_v45 = vld [vmem:[#allocation2 + $0x60] sm:$0xff] }
  0x31   :  { %77 = vperm.xlu0 %1233, %v67_v18   ;;  %1168 = vmatprep.subr.bf16.mxu1 %v1326_v1  ;;  %v197_v43 = vld [vmem:[#allocation5 + $0x58] sm:$0xff]  ;;  %v1154_v44 = vpack.c.bf16 %v111_v40, %v110_v39  ;;  %v113_v46 = vld [vmem:[#allocation2 + $0x68] sm:$0xff]  ;;  %v198_v48 = vld [vmem:[#allocation5 + $0x60] sm:$0xff] }
  0x32   :  { %80 = vperm.xlu1 %1234, %v68_v21   ;;  %v1178_v47 = vpack.c.bf16 %v197_v43, %v196_v42  ;;  %v199_v49 = vld [vmem:[#allocation5 + $0x68] sm:$0xff]  ;;  %v1157_v50 = vpack.c.bf16 %v113_v46, %v112_v45  ;;  %v114_v51 = vld [vmem:[#allocation2 + $0x70] sm:$0xff]  ;;  %v115_v52 = vld [vmem:[#allocation2 + $0x78] sm:$0xff]  ;;  %v467_v21 = vadd.s32 1, %v1439_v59 }
  0x33   :  { %1146 = vmatpush3.bf16.msra.mxu0 %v1145_v25  ;;  %v1181_v53 = vpack.c.bf16 %v199_v49, %v198_v48  ;;  %v200_v54 = vld [vmem:[#allocation5 + $0x70] sm:$0xff]  ;;  %v201_v55 = vld [vmem:[#allocation5 + $0x78] sm:$0xff]  ;;  %v1160_v56 = vpack.c.bf16 %v115_v52, %v114_v51 }
  0x34   :  { %1147 = vmatprep.subr.bf16.mxu0 %v1326_v1  ;;  %1170 = vmatpush3.bf16.msra.mxu1 %v1422_v29  ;;  %v1184_v57 = vpack.c.bf16 %v201_v55, %v200_v54  ;;  %v468_v24 = vmul.u32 5, %v467_v21 }
  0x35   :  { %83 = vperm.xlu0 %1233, %v69_v26   ;;  %1171 = vmatprep.subr.bf16.mxu1 %v1326_v1 }
  0x37   :  { %1149 = vmatpush3.bf16.msra.mxu0 %v1148_v32 }
  0x38   :  { %1150 = vmatprep.subr.bf16.mxu0 %v1326_v1  ;;  %1173 = vmatpush3.bf16.msra.mxu1 %v1172_v35 }
  0x39   :  { %1174 = vmatprep.subr.bf16.mxu1 %v1326_v1 }
  0x3b   :  { %1152 = vmatpush3.bf16.msra.mxu0 %v1151_v38 }
  0x3c   :  { %1153 = vmatprep.subr.bf16.mxu0 %v1326_v1  ;;  %1176 = vmatpush3.bf16.msra.mxu1 %v1175_v41 }
  0x3d   :  { %1177 = vmatprep.subr.bf16.mxu1 %v1326_v1 }
  0x3f   :  { %1155 = vmatpush3.bf16.msra.mxu0 %v1154_v44 }
  0x40   :  { %1156 = vmatprep.subr.bf16.mxu0 %v1326_v1  ;;  %1179 = vmatpush3.bf16.msra.mxu1 %v1178_v47 }
  0x41   :  { %1180 = vmatprep.subr.bf16.mxu1 %v1326_v1 }
  0x43   :  { %1158 = vmatpush3.bf16.msra.mxu0 %v1157_v50 }
  0x44   :  { %1159 = vmatprep.subr.bf16.mxu0 %v1326_v1  ;;  %1182 = vmatpush3.bf16.msra.mxu1 %v1181_v53 }
  0x45   :  { %1183 = vmatprep.subr.bf16.mxu1 %v1326_v1 }
  0x47   :  { %1161 = vmatpush3.bf16.msra.mxu0 %v1160_v56 }
  0x48   :  { %1186 = vmatprep.subr.bf16.mxu0 %v1326_v1  ;;  %1185 = vmatpush3.bf16.msra.mxu1 %v1184_v57 }
  0x49   :  { %1091 = vmatprep.subr.mxu1 %v1328_v5 }
  0xa8   :  { %v54_v60 = vpop.permute.xlu0 %53 }
  0xa9   :  { %vm55_vm1 = vcmp.eq.s32.totalorder %v1439_v59, %v54_v60  ;;  %v72_v63 = vpop.permute.xlu1 %71 }
  0xaa   :  { %1007 = vmatmul.mubr.msk.f32.vlgmr.msra.gmra.mrb[0].mxu0 %vm55_vm1, %v1329_v61  ;;  %vm85_vm3 = vcmp.eq.s32.totalorder %v1439_v59, %v72_v63 }
  0xab   :  { %1188 = vmatpush3.bf16.msra.mxu0 %v1404_v15  ;;  %1076 = vmatprep.mubr.msk.f32.mxu0 %vm1327_vm0, %v1328_v5 }
  0xac   :  { %v61_v62 = vpop.permute.xlu0 %60  ;;  %1189 = vmatprep.subr.bf16.mxu0 %v1326_v1 }
  0xad   :  { %vm62_vm2 = vcmp.eq.s32.totalorder %v1439_v59, %v61_v62  ;;  %v75_v0 = vpop.permute.xlu1 %74 }
  0xae   :  { %1042 = vmatmul.mubr.msk.f32.vlgmr.msra.gmra.mrb[0].mxu1 %vm62_vm2, %v1329_v61  ;;  %vm86_vm4 = vcmp.eq.s32.totalorder %v1439_v59, %v75_v0 }
  0xaf   :  { %1191 = vmatpush3.bf16.msra.mxu0 %v1414_v22  ;;  %1093 = vmatprep.mubr.msk.f32.mxu1 %vm1327_vm0, %v1328_v5  ;;  %v1490_v22 = vshrl.u32 %v49_v58, 7 }
  0xb0   :  { %1192 = vmatprep.subr.bf16.mxu0 %v1326_v1  ;;  %v78_v2 = vpop.permute.xlu0 %77 }
  0xb1   :  { %vm87_vm5 = vcmp.eq.s32.totalorder %v1439_v59, %v78_v2  ;;  %v81_v3 = vpop.permute.xlu1 %80  ;;  %vm462_vm8 = vcmp.ge.s32.totalorder %v1490_v22, %v461_v23  ;;  %vm469_vm9 = vcmp.lt.s32.totalorder %v1490_v22, %v468_v24  ;;  %v457_v25 = vadd.s32 8, %v1490_v22 }
  0xb2   :  { %vm88_vm6 = vcmp.eq.s32.totalorder %v1439_v59, %v81_v3  ;;  %vm474_vm10 = vmand %vm462_vm8, %vm469_vm9  ;;  %v458_v26 = vadd.s32 16, %v1490_v22  ;;  %v460_v31 = vadd.s32 32, %v1490_v22  ;;  %vm639_vm9 = vcmask 7168  }
  0xb3   :  { %1194 = vmatpush3.bf16.msra.mxu0 %v1422_v29  ;;  %vm463_vm11 = vcmp.ge.s32.totalorder %v457_v25, %v461_v23  ;;  %vm470_vm12 = vcmp.lt.s32.totalorder %v457_v25, %v468_v24  ;;  %v879_v27 = vsel %vm474_vm10, 1.0, %v1328_v5  ;;  %v459_v29 = vadd.s32 24, %v1490_v22 }
  0xb4   :  { %1195 = vmatprep.subr.bf16.mxu0 %v1326_v1  ;;  %v84_v4 = vpop.permute.xlu0 %83  ;;  %vm475_vm14 = vmand %vm463_vm11, %vm470_vm12  ;;  %vm464_vm15 = vcmp.ge.s32.totalorder %v458_v26, %v461_v23  ;;  %vm471_vm1 = vcmp.lt.s32.totalorder %v458_v26, %v468_v24 }
  0xb5   :  { %vm89_vm7 = vcmp.eq.s32.totalorder %v1439_v59, %v84_v4  ;;  %v880_v30 = vsel %vm475_vm14, 1.0, %v1328_v5  ;;  %vm476_vm2 = vmand %vm464_vm15, %vm471_vm1 }
  0xb6   :  { %v881_v32 = vsel %vm476_vm2, 1.0, %v1328_v5 }
  0xb7   :  { %1197 = vmatpush3.bf16.msra.mxu0 %v1172_v35 }
  0xb8   :  { %1198 = vmatprep.subr.bf16.mxu0 %v1326_v1 }
  0xbb   :  { %1200 = vmatpush3.bf16.msra.mxu0 %v1175_v41 }
  0xbc   :  { %1201 = vmatprep.subr.bf16.mxu0 %v1326_v1 }
  0xbf   :  { %1203 = vmatpush3.bf16.msra.mxu0 %v1178_v47 }
  0xc0   :  { %1204 = vmatprep.subr.bf16.mxu0 %v1326_v1 }
  0xc3   :  { %1206 = vmatpush3.bf16.msra.mxu0 %v1181_v53 }
  0xc4   :  { %1207 = vmatprep.subr.bf16.mxu0 %v1326_v1 }
  0xc7   :  { %1209 = vmatpush3.bf16.msra.mxu0 %v1184_v57 }
  0xca   :  { %1077 = vmatmul.mubr.msk.f32.vlgmr.msra.gmra.mrb[2].mxu0 %vm85_vm3, %v1329_v61  ;;  %vm465_vm3 = vcmp.ge.s32.totalorder %v459_v29, %v461_v23 }
  0xcb   :  { %1079 = vmatprep.mubr.msk.f32.mxu0 %vm1327_vm0, %v1328_v5 }
  0xce   :  { %1080 = vmatmul.mubr.msk.f32.gmra.mrb[4].mxu0 %vm86_vm4, %v1329_v61  ;;  %vm472_vm4 = vcmp.lt.s32.totalorder %v459_v29, %v468_v24  ;;  %v489_v29 = vmul.u32 5, %v1490_v22 }
  0xcf   :  { %1082 = vmatprep.mubr.msk.f32.mxu0 %vm1327_vm0, %v1328_v5 }
  0xd2   :  { %1083 = vmatmul.mubr.msk.f32.gmra.mrb[6].mxu0 %vm87_vm5, %v1329_v61  ;;  %vm477_vm5 = vmand %vm465_vm3, %vm472_vm4 }
  0xd3   :  { %1085 = vmatprep.mubr.msk.f32.mxu0 %vm1327_vm0, %v1328_v5  ;;  %v882_v33 = vsel %vm477_vm5, 1.0, %v1328_v5  ;;  %vm759_vm5 = vcmask 326656  }
  0xd6   :  { %1086 = vmatmul.mubr.msk.f32.gmra.mrb[8].mxu0 %vm88_vm6, %v1329_v61  ;;  %vm466_vm6 = vcmp.ge.s32.totalorder %v460_v31, %v461_v23 }
  0xd7   :  { %1088 = vmatprep.mubr.msk.f32.mxu0 %vm1327_vm0, %v1328_v5 }
  0xda   :  { %1089 = vmatmul.mubr.msk.f32.gmra.mrb[10].mxu0 %vm89_vm7, %v1329_v61  ;;  %vm473_vm7 = vcmp.lt.s32.totalorder %v460_v31, %v468_v24  ;;  %v491_v24 = vadd.s32 1, %v1490_v22 }
  0xdb   :  { %vm478_vm8 = vmand %vm466_vm6, %vm473_vm7 }
  0xdc   :  { %v883_v34 = vsel %vm478_vm8, 1.0, %v1328_v5 }
 0x17d   :  { %v182_v6 = vpop.f32.mrb[0].mxu0 }
 0x17e   :  { %v1008_v7 = vpop.f32.mrb[1].mxu0  ;;  %1092 = vmatpush3.xpose.msra.mxu1 %v182_v6 }
 0x17f   :  { %1108 = vmatprep.subr.mxu1 %v1328_v5 }
 0x181   :  { %v268_v8 = vpop.f32.mrb[0].mxu1 }
 0x182   :  { %v362_v9 = vmul.f32 %v268_v8, %v182_v6  ;;  %v1043_v10 = vpop.f32.mrb[1].mxu1 }
 0x184   :  { %363 = vadd.xlane.f32.xlu1 %v362_v9 }
 0x19d   :  { %v338_v11 = vpop.f32.mrb[2].mxu0 }
 0x19e   :  { %v1078_v12 = vpop.f32.mrb[3].mxu0  ;;  %1094 = vmatmul.mubr.f32.vlgmr.msra.gmra.mrb[2].mxu1 %v338_v11 }
 0x19f   :  { %1096 = vmatprep.mubr.msk.f32.mxu1 %vm1327_vm0, %v1328_v5 }
 0x1a1   :  { %v343_v13 = vpop.f32.mrb[4].mxu0 }
 0x1a2   :  { %v1081_v14 = vpop.f32.mrb[5].mxu0  ;;  %1097 = vmatmul.mubr.f32.gmra.mrb[4].mxu1 %v343_v13 }
 0x1a3   :  { %1099 = vmatprep.mubr.msk.f32.mxu1 %vm1327_vm0, %v1328_v5 }
 0x1a5   :  { %v348_v15 = vpop.f32.mrb[6].mxu0 }
 0x1a6   :  { %v1084_v16 = vpop.f32.mrb[7].mxu0  ;;  %1100 = vmatmul.mubr.f32.gmra.mrb[6].mxu1 %v348_v15 }
 0x1a7   :  { %1102 = vmatprep.mubr.msk.f32.mxu1 %vm1327_vm0, %v1328_v5 }
 0x1a9   :  { %v353_v17 = vpop.f32.mrb[8].mxu0 }
 0x1aa   :  { %v1087_v18 = vpop.f32.mrb[9].mxu0  ;;  %1103 = vmatmul.mubr.f32.gmra.mrb[8].mxu1 %v353_v17 }
 0x1ab   :  { %1105 = vmatprep.mubr.msk.f32.mxu1 %vm1327_vm0, %v1328_v5 }
 0x1ad   :  { %v358_v19 = vpop.f32.mrb[10].mxu0 }
 0x1ae   :  { %v1090_v20 = vpop.f32.mrb[11].mxu0  ;;  %1106 = vmatmul.mubr.f32.gmra.mrb[10].mxu1 %v358_v19 }
 0x1af   :  { %1110 = vmatprep.mubr.msk.f32.mxu1 %vm1327_vm0, %v1328_v5 }
 0x211   :  { %v364_v28 = vpop.xlane.xlu1 %363 }
 0x212   :  { %1109 = vmatpush3.msra.mxu1 %v364_v28  ;;  %v623_v35 = vsub.f32 0.0, %v364_v28 }
 0x213   :  { %1111 = vmatmul.mubr.msk.f32.vlgmr.msra.gmra.mrb[12].mxu1 %vm502_vm13, %v879_v27  ;;  %1210 = vmatprep.subr.bf16.mxu1 %v1326_v1 }
 0x214   :  { %1113 = vmatprep.mubr.msk.f32.mxu1 %vm1327_vm0, %v1328_v5  ;;  %v625_v36 = vand.u32 2147483647, %v623_v35  ;;  %v624_v63 = vmax.f32 %v623_v35, 0.0 }
 0x216   :  { %v626_v37 = vsub.f32 0.0, %v625_v36 }
 0x217   :  { %1114 = vmatmul.mubr.msk.f32.gmra.mrb[14].mxu1 %vm502_vm13, %v880_v30 }
 0x218   :  { %1116 = vmatprep.mubr.msk.f32.mxu1 %vm1327_vm0, %v1328_v5  ;;  %v627_v38 = vmul.f32 1.442695, %v626_v37 }
 0x21a   :  { %1235 = vpow2.f32 %v627_v38 }
 0x21b   :  { %1117 = vmatmul.mubr.msk.f32.gmra.mrb[16].mxu1 %vm502_vm13, %v881_v32 }
 0x21c   :  { %1119 = vmatprep.mubr.msk.f32.mxu1 %vm1327_vm0, %v1328_v5 }
 0x21f   :  { %1120 = vmatmul.mubr.msk.f32.gmra.mrb[18].mxu1 %vm502_vm13, %v882_v33 }
 0x220   :  { %1122 = vmatprep.mubr.msk.f32.mxu1 %vm1327_vm0, %v1328_v5 }
 0x223   :  { %1123 = vmatmul.mubr.msk.f32.gmra.mrb[20].mxu1 %vm502_vm13, %v883_v34 }
 0x224   :  { %1135 = vmatprep.mubr.msk.f32.mxu1 %vm1327_vm0, %v1328_v5  ;;  %v1236_v39 = vpop.eup %1235 }
 0x225   :  { %v629_v40 = vadd.f32 1.0, %v1236_v39  ;;  %v632_v44 = vmul.f32 -0.5, %v1236_v39  ;;  %v635_v52 = vand.u32 2147483647, %v1236_v39 }
 0x227   :  { %1237 = vlog2.f32 %v629_v40  ;;  %v633_v50 = vadd.f32 1.0, %v632_v44  ;;  %vm636_vm0 = vcmp.lt.f32.partialorder %v635_v52, 0.0004427343 }
 0x229   :  { %v634_v57 = vmul.f32 %v1236_v39, %v633_v50 }
 0x231   :  { %v1238_v47 = vpop.eup %1237 }
 0x232   :  { %v631_v54 = vmul.f32 0.6931472, %v1238_v47 }
 0x234   :  { %v637_v62 = vsel %vm636_vm0, %v634_v57, %v631_v54 }
 0x235   :  { %v638_v4 = vadd.f32 %v637_v62, %v624_v63 }
 0x237   :  { %v640_v9 = vsel %vm639_vm9, %v638_v4, 0.0 }
 0x271   :  { %v431_v41 = vpop.f32.mrb[2].mxu1 }
 0x272   :  { %v497_v42 = vmul.f32 %v879_v27, %v431_v41  ;;  %v1095_v43 = vpop.f32.mrb[3].mxu1 }
 0x274   :  { %v503_v45 = vsel %vm502_vm13, %v497_v42, 0.0 }
 0x275   :  { %504 = vadd.xlane.f32.xlu0 %v503_v45  ;;  %v436_v46 = vpop.f32.mrb[4].mxu1 }
 0x276   :  { %v498_v48 = vmul.f32 %v880_v30, %v436_v46  ;;  %v1098_v49 = vpop.f32.mrb[5].mxu1  ;;  %v492_v30 = vmul.u32 5, %v491_v24 }
 0x278   :  { %v506_v51 = vsel %vm502_vm13, %v498_v48, 0.0  ;;  %vm1546_vm14 = vcmp.lt.s32.totalorder %v1439_v59, %v492_v30 }
 0x279   :  { %507 = vadd.xlane.f32.xlu0 %v506_v51  ;;  %v441_v53 = vpop.f32.mrb[6].mxu1 }
 0x27a   :  { %v499_v55 = vmul.f32 %v881_v32, %v441_v53  ;;  %v1101_v56 = vpop.f32.mrb[7].mxu1  ;;  %v1330_v32 = vmov 1.0|1.0  }
 0x27c   :  { %v509_v58 = vsel %vm502_vm13, %v499_v55, 0.0 }
 0x27d   :  { %510 = vadd.xlane.f32.xlu1 %v509_v58  ;;  %v446_v60 = vpop.f32.mrb[8].mxu1 }
 0x27e   :  { %v500_v0 = vmul.f32 %v882_v33, %v446_v60  ;;  %v1104_v2 = vpop.f32.mrb[9].mxu1 }
 0x280   :  { %v512_v3 = vsel %vm502_vm13, %v500_v0, 0.0 }
 0x281   :  { %513 = vadd.xlane.f32.xlu0 %v512_v3  ;;  %v451_v6 = vpop.f32.mrb[10].mxu1 }
 0x282   :  { %v501_v7 = vmul.f32 %v883_v34, %v451_v6  ;;  %v1107_v8 = vpop.f32.mrb[11].mxu1 }
 0x284   :  { %v515_v10 = vsel %vm502_vm13, %v501_v7, 0.0  ;;  %vm1541_vm13 = vcmp.ge.s32.totalorder %v1439_v59, %v489_v29 }
 0x285   :  { %641 = vadd.xlane.f32.xlu0 %v640_v9  ;;  %516 = vadd.xlane.f32.xlu1 %v515_v10  ;;  %vm494_vm2 = vmand %vm1541_vm13, %vm1546_vm14 }
 0x286   :  { %v884_v42 = vsel %vm494_vm2, 1.0, %v1328_v5 }
 0x2e6   :  { %v599_v11 = vpop.f32.mrb[12].mxu1 }
 0x2e7   :  { %v1112_v12 = vpop.f32.mrb[13].mxu1 }
 0x2ea   :  { %v604_v13 = vpop.f32.mrb[14].mxu1 }
 0x2eb   :  { %v1115_v14 = vpop.f32.mrb[15].mxu1 }
 0x2ee   :  { %v609_v15 = vpop.f32.mrb[16].mxu1 }
 0x2ef   :  { %v1118_v16 = vpop.f32.mrb[17].mxu1 }
 0x2f2   :  { %v614_v17 = vpop.f32.mrb[18].mxu1 }
 0x2f3   :  { %v1121_v18 = vpop.f32.mrb[19].mxu1 }
 0x2f6   :  { %v619_v19 = vpop.f32.mrb[20].mxu1 }
 0x2f7   :  { %v1124_v20 = vpop.f32.mrb[21].mxu1 }
 0x302   :  { %v1526_v21 = vpop.xlane.xlu0 %504 }
 0x303   :  { %v655_v23 = vand.u32 2147483647, %v1526_v21  ;;  %vm744_vm10 = vcmp.gt.f32.partialorder %v1526_v21, %v599_v11 }
 0x305   :  { %v660_v25 = vsub.f32 0.0, %v655_v23 }
 0x306   :  { %v1530_v26 = vpop.xlane.xlu0 %507 }
 0x307   :  { %v665_v27 = vmul.f32 1.442695, %v660_v25  ;;  %v656_v28 = vand.u32 2147483647, %v1530_v26  ;;  %vm745_vm11 = vcmp.gt.f32.partialorder %v1530_v26, %v604_v13  ;;  %v651_v20 = vmax.f32 %v1530_v26, 0.0 }
 0x308   :  { %vm1211_vm12 = vmpackc.low %vm745_vm11, %vm744_vm10 }
 0x309   :  { %1239 = vpow2.f32 %v665_v27  ;;  %v661_v31 = vsub.f32 0.0, %v656_v28  ;;  %1212 = vmatpush3.bf16.msk.msra.mxu1 %vm1211_vm12, %v1330_v32 }
 0x30a   :  { %v1536_v33 = vpop.xlane.xlu1 %510  ;;  %1213 = vmatprep.subr.bf16.mxu1 %v1326_v1 }
 0x30b   :  { %v667_v34 = vmul.f32 1.442695, %v661_v31  ;;  %v657_v35 = vand.u32 2147483647, %v1536_v33  ;;  %vm746_vm15 = vcmp.gt.f32.partialorder %v1536_v33, %v609_v15  ;;  %v652_v30 = vmax.f32 %v1536_v33, 0.0 }
 0x30d   :  { %1241 = vpow2.f32 %v667_v34  ;;  %v662_v37 = vsub.f32 0.0, %v657_v35 }
 0x30e   :  { %v1550_v38 = vpop.xlane.xlu0 %513 }
 0x30f   :  { %v669_v39 = vmul.f32 1.442695, %v662_v37  ;;  %v658_v1 = vand.u32 2147483647, %v1550_v38  ;;  %vm747_vm1 = vcmp.gt.f32.partialorder %v1550_v38, %v614_v17  ;;  %v653_v26 = vmax.f32 %v1550_v38, 0.0 }
 0x310   :  { %vm1214_vm3 = vmpackc.low %vm747_vm1, %vm746_vm15 }
 0x311   :  { %1243 = vpow2.f32 %v669_v39  ;;  %v663_v59 = vsub.f32 0.0, %v658_v1  ;;  %1215 = vmatpush3.bf16.msk.msra.mxu1 %vm1214_vm3, %v1330_v32 }
 0x312   :  { %v1559_v40 = vpop.xlane.xlu1 %516  ;;  %v642_v41 = vpop.xlane.xlu0 %641  ;;  %1133 = vmatprep.subr.mxu1 %v1328_v5 }
 0x313   :  { %v1240_v43 = vpop.eup %1239  ;;  %v671_v44 = vmul.f32 1.442695, %v663_v59  ;;  %v659_v45 = vand.u32 2147483647, %v1559_v40  ;;  %vm748_vm4 = vcmp.gt.f32.partialorder %v1559_v40, %v619_v19  ;;  %v643_v47 = vrot.slane %v642_v41, 4 }
 0x314   :  { %v675_v46 = vadd.f32 1.0, %v1240_v43  ;;  %v678_v60 = vmul.f32 -0.5, %v1240_v43  ;;  %v681_v8 = vand.u32 2147483647, %v1240_v43  ;;  %v650_v19 = vmax.f32 %v1526_v21, 0.0 }
 0x315   :  { %1245 = vpow2.f32 %v671_v44  ;;  %v664_v48 = vsub.f32 0.0, %v659_v45  ;;  %1134 = vmatpush3.msk.msra.mxu1 %vm748_vm4, %v1329_v61  ;;  %v644_v49 = vadd.f32 %v643_v47, %v642_v41  ;;  %v654_v47 = vmax.f32 %v1559_v40, 0.0 }
 0x316   :  { %1136 = vmatmul.mubr.msk.f32.vlgmr.msra.gmra.mrb[22].mxu1 %vm759_vm5, %v884_v42  ;;  %1247 = vlog2.f32 %v675_v46  ;;  %v679_v6 = vadd.f32 1.0, %v678_v60  ;;  %vm682_vm7 = vcmp.lt.f32.partialorder %v681_v8, 0.0004427343 }
 0x317   :  { %v1242_v50 = vpop.eup %1241  ;;  %v673_v51 = vmul.f32 1.442695, %v664_v48  ;;  %v645_v5 = vrot.slane %v644_v49, 2 }
 0x318   :  { %v684_v52 = vadd.f32 1.0, %v1242_v50  ;;  %v687_v56 = vmul.f32 -0.5, %v1242_v50  ;;  %v690_v3 = vand.u32 2147483647, %v1242_v50  ;;  %v680_v16 = vmul.f32 %v1240_v43, %v679_v6 }
 0x319   :  { %1249 = vpow2.f32 %v673_v51  ;;  %v646_v54 = vadd.f32 %v645_v5, %v644_v49 }
 0x31a   :  { %1251 = vlog2.f32 %v684_v52  ;;  %v688_v0 = vadd.f32 1.0, %v687_v56  ;;  %vm691_vm6 = vcmp.lt.f32.partialorder %v690_v3, 0.0004427343 }
 0x31b   :  { %v1244_v53 = vpop.eup %1243  ;;  %v647_v57 = vrot.slane %v646_v54, 1 }
 0x31c   :  { %v693_v55 = vadd.f32 1.0, %v1244_v53  ;;  %v696_v63 = vmul.f32 -0.5, %v1244_v53  ;;  %v689_v13 = vmul.f32 %v1242_v50, %v688_v0  ;;  %v699_v15 = vand.u32 2147483647, %v1244_v53 }
 0x31d   :  { %v648_v62 = vadd.f32 %v647_v57, %v646_v54 }
 0x31e   :  { %1253 = vlog2.f32 %v693_v55  ;;  %v697_v9 = vadd.f32 1.0, %v696_v63  ;;  %vm700_vm8 = vcmp.lt.f32.partialorder %v699_v15, 0.0004427343 }
 0x31f   :  { %v1246_v58 = vpop.eup %1245  ;;  %1216 = vpush %v648_v62 }
 0x320   :  { %v702_v61 = vadd.f32 1.0, %v1246_v58  ;;  %v1248_v2 = vpop.eup %1247  ;;  %v705_v14 = vmul.f32 -0.5, %v1246_v58  ;;  %v698_v23 = vmul.f32 %v1244_v53, %v697_v9  ;;  %v708_v31 = vand.u32 2147483647, %v1246_v58 }
 0x321   :  { %v677_v11 = vmul.f32 0.6931472, %v1248_v2 }
 0x322   :  { %1255 = vlog2.f32 %v702_v61  ;;  %v706_v27 = vadd.f32 1.0, %v705_v14  ;;  %vm709_vm0 = vcmp.lt.f32.partialorder %v708_v31, 0.0004427343 }
 0x323   :  { %v1250_v4 = vpop.eup %1249  ;;  %v683_v24 = vsel %vm682_vm7, %v680_v16, %v677_v11 }
 0x324   :  { %v1252_v7 = vpop.eup %1251  ;;  %v711_v10 = vadd.f32 1.0, %v1250_v4  ;;  %v714_v28 = vmul.f32 -0.5, %v1250_v4  ;;  %v720_v35 = vadd.f32 %v683_v24, %v650_v19  ;;  %v707_v37 = vmul.f32 %v1246_v58, %v706_v27 }
 0x325   :  { %v686_v12 = vmul.f32 0.6931472, %v1252_v7  ;;  %v717_v1 = vand.u32 2147483647, %v1250_v4 }
 0x326   :  { %1257 = vlog2.f32 %v711_v10  ;;  %v715_v21 = vadd.f32 1.0, %v714_v28  ;;  %v725_v42 = vsel %vm639_vm9, %v720_v35, 0.0 }
 0x327   :  { %v692_v17 = vsel %vm691_vm6, %v689_v13, %v686_v12  ;;  %vm718_vm10 = vcmp.lt.f32.partialorder %v717_v1, 0.0004427343 }
 0x328   :  { %v1254_v18 = vpop.eup %1253  ;;  %v721_v29 = vadd.f32 %v692_v17, %v651_v20  ;;  %v716_v45 = vmul.f32 %v1250_v4, %v715_v21 }
 0x329   :  { %v695_v25 = vmul.f32 0.6931472, %v1254_v18 }
 0x32a   :  { %v726_v39 = vsel %vm639_vm9, %v721_v29, 0.0 }
 0x32b   :  { %v701_v32 = vsel %vm700_vm8, %v698_v23, %v695_v25  ;;  %v727_v46 = vadd.f32 %v726_v39, %v725_v42 }
 0x32c   :  { %v1256_v34 = vpop.eup %1255  ;;  %v722_v36 = vadd.f32 %v701_v32, %v652_v30 }
 0x32d   :  { %v704_v22 = vmul.f32 0.6931472, %v1256_v34 }
 0x32e   :  { %v728_v43 = vsel %vm639_vm9, %v722_v36, 0.0 }
 0x32f   :  { %v710_v59 = vsel %vm709_vm0, %v707_v37, %v704_v22  ;;  %v729_v50 = vadd.f32 %v728_v43, %v727_v46 }
 0x330   :  { %v1258_v41 = vpop.eup %1257  ;;  %v723_v33 = vadd.f32 %v710_v59, %v653_v26 }
 0x331   :  { %v713_v44 = vmul.f32 0.6931472, %v1258_v41 }
 0x332   :  { %v730_v48 = vsel %vm639_vm9, %v723_v33, 0.0 }
 0x333   :  { %v719_v49 = vsel %vm718_vm10, %v716_v45, %v713_v44  ;;  %v731_v51 = vadd.f32 %v730_v48, %v729_v50 }
 0x334   :  { %v724_v38 = vadd.f32 %v719_v49, %v654_v47 }
 0x336   :  { %v732_v52 = vsel %vm639_vm9, %v724_v38, 0.0 }
 0x337   :  { %v733_v5 = vadd.f32 %v732_v52, %v731_v51 }
 0x339   :  { %734 = vadd.xlane.f32.xlu1 %v733_v5 }
 0x350   :  { %s1217_s2 = spop %1216 }
 0x3c6   :  { %v735_v53 = vpop.xlane.xlu1 %734 }
 0x3c7   :  { %v736_v54 = vrot.slane %v735_v53, 4 }
 0x3c9   :  { %v737_v55 = vadd.f32 %v736_v54, %v735_v53 }
 0x3cb   :  { %v738_v56 = vrot.slane %v737_v55, 2 }
 0x3cd   :  { %v739_v57 = vadd.f32 %v738_v56, %v737_v55 }
 0x3cf   :  { %v740_v58 = vrot.slane %v739_v57, 1 }
 0x3d1   :  { %v741_v60 = vadd.f32 %v740_v58, %v739_v57 }
 0x3d3   :  { %1218 = vpush %v741_v60 }
 0x3e9   :  { %v829_v40 = vpop.f32.mrb[22].mxu1 }
 0x3ea   :  { %v830_v62 = vadd.f32 1.0, %v829_v40  ;;  %v1137_v63 = vpop.f32.mrb[23].mxu1 }
 0x3ec   :  { %1259 = vrcp.f32 %v830_v62 }
 0x3f6   :  { %v1260_v61 = vpop.eup %1259 }
 0x3f7   :  { %v835_v0 = vsel %vm639_vm9, %v1260_v61, 0.0 }
 0x3f8   :  { %836 = vadd.xlane.f32.xlu0 %v835_v0 }
 0x404   :  { %s1219_s29 = spop %1218 }
 0x405   :  { %s743_s30 = sadd.f32 %s1219_s29, %s1217_s2 }
 0x407   :  { %847 = sst [smem:[#allocation7]] %s743_s30 }
 0x485   :  { %v837_v2 = vpop.xlane.xlu0 %836 }
 0x486   :  { %v838_v3 = vrot.slane %v837_v2, 4 }
 0x488   :  { %v839_v4 = vadd.f32 %v838_v3, %v837_v2 }
 0x48a   :  { %v840_v6 = vrot.slane %v839_v4, 2 }
 0x48c   :  { %v841_v7 = vadd.f32 %v840_v6, %v839_v4 }
 0x48e   :  { %v842_v8 = vrot.slane %v841_v7, 1 }
 0x490   :  { %v843_v9 = vadd.f32 %v842_v8, %v841_v7 }
 0x492   :  { %1220 = vpush %v843_v9 }
 0x4c3   :  { %s1221_s6 = spop %1220 }
 0x4c4   :  { %s845_s7 = smul.f32 0.125, %s1221_s6 }
 0x4c6   :  { %849 = sst [smem:[#allocation7 + $0x1]] %s845_s7 }
 0x4c7   :  { %1314 = shalt.err (!%p1311_p4)
}
 0x4c8   :  { %s1331_s15 = smov [#allocation7]  }
 0x4c9   :  { %857 = dma.smem_to_hbm %s1331_s15, 16, %s1594_s5, [#allocation4]  }
 0x4ca   :  { %1319 = dma.done.wait [#allocation4], 16  }
 0x4cb   :  { %1320 = vsyncadd [#allocation4], 4294967280 }
 0x4cc   :  { %861 = sfence }
 0x4cd   :  { %862 = vsyncpa [#allocation3], 1 }
 0x4ce   :  { %863 = vsyncpa [#allocation6], 1 }
 0x4cf   :  { %864 = vsyncpa [#allocation4], 1 }

</bundles_post_ra>
